<compile_context>
chip_gen: v7x
topology: tpu7x:2x2x1
jax: 0.10.0
libtpu: 0.0.40
codegen_flags: <defaults>
</compile_context>

<pallas_src>
import math

import jax
import jax.numpy as jnp
import numpy as np
from jax.experimental import pallas as pl
from jax.experimental.pallas import tpu as pltpu

LANE = 128      # TPU lane width; every layer's output features are padded to this
NL = 7          # number of layers after fusing the 12->3->12 bottleneck pair
ROW_TILE = 16   # bf16 sublane tile: keep every row block a multiple of 16


def _round_up(x, m):
    return (x + m - 1) // m * m


# ----------------------------------------------------------------------------
# Kernel: push one (TM, sd_pad) bf16 batch-row tile through all 7 fused layers.
# ----------------------------------------------------------------------------
def _autoencoder_kernel(x_ref, w_ref, b_ref, o_ref):
    sd_pad = x_ref.shape[1]
    # Layer 0: narrow-K matmul against a static, tile-aligned slice of the
    # resident first-layer weight (weight rows >= sd are zero anyway).
    h = jnp.dot(x_ref[...], w_ref[0][:sd_pad, :],
                preferred_element_type=jnp.float32) + b_ref[0]
    h = jnp.maximum(h, 0.0)
    for l in range(1, NL):                              # statically unrolled
        # bf16 operands -> full-rate MXU path; f32 accumulation.
        y = jnp.dot(h.astype(jnp.bfloat16), w_ref[l],
                    preferred_element_type=jnp.float32) + b_ref[l]
        # layers 1..5: ReLU on the VPU; last layer: tanh on the EUP (all f32).
        h = jnp.maximum(y, 0.0) if l < NL - 1 else jnp.tanh(y)
    o_ref[...] = h.astype(o_ref.dtype)                  # lane-dense f32 store


# ----------------------------------------------------------------------------
# Parameter preparation: fuse the activation-free pair, pad + pack.
# ----------------------------------------------------------------------------
def _fuse_params(params):
    """params: 8 x (W(in,out) f32, b(1,out) f32). Returns 7 fused layers."""
    (w1, b1), (w2, b2), (w3, b3), (w4, b4), (w5, b5), (w6, b6), (w7, b7), (w8, b8) = params
    # Linear(12,3) followed immediately by Linear(3,12) with no nonlinearity:
    w45 = w4 @ w5                    # (12, 12)
    b45 = b4 @ w5 + b5               # (1, 12)
    return [(w1, b1), (w2, b2), (w3, b3), (w45, b45), (w6, b6), (w7, b7), (w8, b8)]


def prepare_params(params):
    """Pack fused layers into one bf16 weight buffer and one f32 bias buffer.

    Zero padding keeps the math exact: padded W rows/cols and padded b lanes
    are 0, so padded activation lanes stay 0 through every layer.
    """
    fused = _fuse_params(params)
    assert len(fused) == NL
    wp = jnp.zeros((NL, LANE, LANE), jnp.float32)
    bp = jnp.zeros((NL, 1, LANE), jnp.float32)
    for l, (w, b) in enumerate(fused):
        fin, fout = w.shape
        assert fin <= LANE and fout <= LANE
        wp = wp.at[l, :fin, :fout].set(w)
        bp = bp.at[l, 0, :fout].set(b.reshape(-1))
    return wp.astype(jnp.bfloat16), bp


# ----------------------------------------------------------------------------
# Wrapper
# ----------------------------------------------------------------------------
def _choose_row_tile(batch, tm_max):
    """Row tile: multiple of 16, as large as possible (<= tm_max), but at least
    two grid steps for any batch bigger than one minimal tile so both v7x
    TensorCores get work when the batch axis is sharded."""
    if batch <= ROW_TILE:
        return ROW_TILE
    half = _round_up((batch + 1) // 2, ROW_TILE)
    return max(ROW_TILE, min(_round_up(tm_max, ROW_TILE), half))


def autoencoder_forward(x, wp, bp, sd, tm=2048):
    """x: (B, sd) f32;  wp: (7,128,128) bf16;  bp: (7,1,128) f32."""
    batch = x.shape[0]
    assert x.shape[1] == sd
    assert sd <= LANE  # TODO(synk): sd > 128 would need K/N tiling of the first/last layer.

    sd_pad = min(LANE, _round_up(sd, 16))
    tm_eff = _choose_row_tile(batch, tm)
    b_pad = _round_up(batch, tm_eff)
    grid = (b_pad // tm_eff,)

    # Narrow bf16 input slab: the first-layer cast to bf16 happened in-kernel
    # before, so this loses no precision while cutting input HBM bytes ~8x and
    # keeping the wrapper-side pad pass tiny.
    xb = x.astype(jnp.bfloat16)
    if b_pad != batch or sd_pad != sd:
        xb = jnp.pad(xb, ((0, b_pad - batch), (0, sd_pad - sd)))

    out = pl.pallas_call(
        _autoencoder_kernel,
        out_shape=jax.ShapeDtypeStruct((b_pad, LANE), jnp.float32),
        grid_spec=pltpu.PrefetchScalarGridSpec(
            num_scalar_prefetch=0,
            grid=grid,
            in_specs=[
                pl.BlockSpec((tm_eff, sd_pad), lambda i: (i, 0)),      # x tile (streamed, bf16)
                pl.BlockSpec((NL, LANE, LANE), lambda i: (0, 0, 0)),   # weights (resident)
                pl.BlockSpec((NL, 1, LANE), lambda i: (0, 0, 0)),      # biases  (resident)
            ],
            out_specs=pl.BlockSpec((tm_eff, LANE), lambda i: (i, 0)),  # lane-dense f32
        ),
        compiler_params=pltpu.CompilerParams(
            dimension_semantics=("parallel",),
            vmem_limit_bytes=48 * 1024 * 1024),
    )(xb, wp, bp)

    return out[:batch, :sd]


# ----------------------------------------------------------------------------
# Deterministic parameter init, mirroring the module's `random_weight` quirk:
#   2-D weight (out,in): scale = sqrt(2 / out)   (fan_in taken as shape[0])
#   1-D bias   (out,)  : scale = sqrt(2 / 1)     (np.prod of empty tuple == 1)
# Weights are stored transposed as (in, out) so the kernel computes h @ W + b.
# ----------------------------------------------------------------------------
def init_params(key, sd):
    dims = [(sd, 128), (128, 64), (64, 12), (12, 3),      # encoder
            (3, 12), (12, 64), (64, 128), (128, sd)]      # decoder
    params = []
    for (fin, fout) in dims:
        key, kw, kb = jax.random.split(key, 3)
        w_scale = math.sqrt(2.0 / fout)   # torch weight shape (out,in) -> fan_in = out
        b_scale = math.sqrt(2.0 / 1.0)    # torch bias shape (out,) -> prod(shape[1:]) = 1
        w = jax.random.normal(kw, (fin, fout), dtype=jnp.float32) * w_scale
        b = jax.random.normal(kb, (1, fout), dtype=jnp.float32) * b_scale
        params.append((w, b))
    return params


# ----------------------------------------------------------------------------
# References
# ----------------------------------------------------------------------------
def reference_forward_f32(x, params):
    """Original module semantics, pure f32, unfused."""
    h = x
    for i, (w, b) in enumerate(params):
        h = h @ w + b
        if i in (0, 1, 2, 4, 5, 6):
            h = jnp.maximum(h, 0.0)
    return jnp.tanh(h)


def reference_forward_packed(x, wp, bp, sd):
    """Same dtype path as the kernel (fused, padded, bf16 operands, f32 acc)."""
    h = jnp.zeros((x.shape[0], LANE), jnp.float32).at[:, :sd].set(x)
    for l in range(NL):
        y = jnp.dot(h.astype(jnp.bfloat16), wp[l],
                    preferred_element_type=jnp.float32) + bp[l]
        h = jnp.maximum(y, 0.0) if l < NL - 1 else jnp.tanh(y)
    return h[:, :sd]


if __name__ == "__main__":
    SD = 32  # the `sd` constructor argument (input / output feature dim)

    key = jax.random.PRNGKey(0)
    kx, kp = jax.random.split(key)
    params = init_params(kp, SD)
    wp, bp = prepare_params(params)

    # Exercise the single-tile path (tiny batch), the 2-step balanced grid
    # (batch=384 -> two 192-row tiles), and the large-tile path (batch=4096 ->
    # two 2048-row tiles).
    for batch in (8, 384, 4096):
        x = jax.random.normal(jax.random.fold_in(kx, batch), (batch, SD),
                              dtype=jnp.float32)

        out = jax.block_until_ready(autoencoder_forward(x, wp, bp, SD, tm=2048))
        assert out.shape == (batch, SD)

        # Tight check against a reference that follows the exact kernel dtype path.
        ref_exact = reference_forward_packed(x, wp, bp, SD)
        np.testing.assert_allclose(np.asarray(out), np.asarray(ref_exact),
                                   rtol=1e-4, atol=1e-4)

        # Loose check against the original (f32, unfused) module semantics; the
        # only differences are bf16 matmul operands and the exact W4@W5 fusion.
        if batch <= 384:
            ref_f32 = reference_forward_f32(x, params)
            np.testing.assert_allclose(np.asarray(out), np.asarray(ref_f32),
                                       rtol=0.0, atol=0.25)

    print("KERNEL_OK")
</pallas_src>

<mosaic_0001>
module attributes {stable_mosaic.version = 11 : i64} {
  func.func @_autoencoder_kernel(%arg0: i32, %arg1: memref<16x32xbf16, #tpu.memory_space<vmem>>, %arg2: memref<7x128x128xbf16, #tpu.memory_space<vmem>>, %arg3: memref<7x1x128xf32, #tpu.memory_space<vmem>>, %arg4: memref<16x128xf32, #tpu.memory_space<vmem>>) attributes {dimension_semantics = [#tpu.dimension_semantics<parallel>], iteration_bounds = array<i64: 1>, scalar_prefetch = 0 : i64, scratch_operands = 0 : i64, tpu.core_type = #tpu.core_type<tc>, window_params = [{transform_indices = @transform_0, window_bounds = array<i64: 16, 32>}, {pipeline_mode = #tpu.pipeline_mode<synchronous>, transform_indices = @transform_1, window_bounds = array<i64: 7, 128, 128>}, {pipeline_mode = #tpu.pipeline_mode<synchronous>, transform_indices = @transform_2, window_bounds = array<i64: 7, 1, 128>}, {transform_indices = @transform_3, window_bounds = array<i64: 16, 128>}]} {
    %c0 = arith.constant 0 : index
    %c0_0 = arith.constant 0 : index
    %0 = vector.load %arg1[%c0, %c0_0] : memref<16x32xbf16, #tpu.memory_space<vmem>>, vector<16x32xbf16>
    %c0_1 = arith.constant 0 : index
    %c0_2 = arith.constant 0 : index
    %c0_3 = arith.constant 0 : index
    %1 = vector.load %arg2[%c0_1, %c0_2, %c0_3] : memref<7x128x128xbf16, #tpu.memory_space<vmem>>, vector<1x128x128xbf16>
    %2 = vector.shape_cast %1 : vector<1x128x128xbf16> to vector<128x128xbf16>
    %3 = vector.extract_strided_slice %2 {offsets = [0, 0], sizes = [32, 128], strides = [1, 1]} : vector<128x128xbf16> to vector<32x128xbf16>
    %cst = arith.constant dense<0.000000e+00> : vector<16x128xf32>
    %4 = tpu.matmul %0, %3, %cst {dimension_numbers = #tpu.dot_dimension_numbers<[1], [0], [0], [1], [0, 0, 1, 1], [], []>} : vector<16x32xbf16>, vector<32x128xbf16>, vector<16x128xf32> -> vector<16x128xf32>
    %c0_4 = arith.constant 0 : index
    %c0_5 = arith.constant 0 : index
    %c0_6 = arith.constant 0 : index
    %5 = vector.load %arg3[%c0_4, %c0_5, %c0_6] : memref<7x1x128xf32, #tpu.memory_space<vmem>>, vector<1x1x128xf32>
    %6 = vector.shape_cast %5 : vector<1x1x128xf32> to vector<1x128xf32>
    %7 = vector.broadcast %6 : vector<1x128xf32> to vector<16x128xf32>
    %8 = arith.addf %4, %7 : vector<16x128xf32>
    %cst_7 = arith.constant 0.000000e+00 : f32
    %9 = vector.broadcast %cst_7 : f32 to vector<16x128xf32>
    %10 = arith.maximumf %8, %9 : vector<16x128xf32>
    %11 = arith.truncf %10 : vector<16x128xf32> to vector<16x128xbf16>
    %c1 = arith.constant 1 : index
    %c0_8 = arith.constant 0 : index
    %c0_9 = arith.constant 0 : index
    %12 = vector.load %arg2[%c1, %c0_8, %c0_9] : memref<7x128x128xbf16, #tpu.memory_space<vmem>>, vector<1x128x128xbf16>
    %13 = vector.shape_cast %12 : vector<1x128x128xbf16> to vector<128x128xbf16>
    %cst_10 = arith.constant dense<0.000000e+00> : vector<16x128xf32>
    %14 = tpu.matmul %11, %13, %cst_10 {dimension_numbers = #tpu.dot_dimension_numbers<[1], [0], [0], [1], [0, 0, 1, 1], [], []>} : vector<16x128xbf16>, vector<128x128xbf16>, vector<16x128xf32> -> vector<16x128xf32>
    %c1_11 = arith.constant 1 : index
    %c0_12 = arith.constant 0 : index
    %c0_13 = arith.constant 0 : index
    %15 = vector.load %arg3[%c1_11, %c0_12, %c0_13] : memref<7x1x128xf32, #tpu.memory_space<vmem>>, vector<1x1x128xf32>
    %16 = vector.shape_cast %15 : vector<1x1x128xf32> to vector<1x128xf32>
    %17 = vector.broadcast %16 : vector<1x128xf32> to vector<16x128xf32>
    %18 = arith.addf %14, %17 : vector<16x128xf32>
    %cst_14 = arith.constant 0.000000e+00 : f32
    %19 = vector.broadcast %cst_14 : f32 to vector<16x128xf32>
    %20 = arith.maximumf %18, %19 : vector<16x128xf32>
    %21 = arith.truncf %20 : vector<16x128xf32> to vector<16x128xbf16>
    %c2 = arith.constant 2 : index
    %c0_15 = arith.constant 0 : index
    %c0_16 = arith.constant 0 : index
    %22 = vector.load %arg2[%c2, %c0_15, %c0_16] : memref<7x128x128xbf16, #tpu.memory_space<vmem>>, vector<1x128x128xbf16>
    %23 = vector.shape_cast %22 : vector<1x128x128xbf16> to vector<128x128xbf16>
    %cst_17 = arith.constant dense<0.000000e+00> : vector<16x128xf32>
    %24 = tpu.matmul %21, %23, %cst_17 {dimension_numbers = #tpu.dot_dimension_numbers<[1], [0], [0], [1], [0, 0, 1, 1], [], []>} : vector<16x128xbf16>, vector<128x128xbf16>, vector<16x128xf32> -> vector<16x128xf32>
    %c2_18 = arith.constant 2 : index
    %c0_19 = arith.constant 0 : index
    %c0_20 = arith.constant 0 : index
    %25 = vector.load %arg3[%c2_18, %c0_19, %c0_20] : memref<7x1x128xf32, #tpu.memory_space<vmem>>, vector<1x1x128xf32>
    %26 = vector.shape_cast %25 : vector<1x1x128xf32> to vector<1x128xf32>
    %27 = vector.broadcast %26 : vector<1x128xf32> to vector<16x128xf32>
    %28 = arith.addf %24, %27 : vector<16x128xf32>
    %cst_21 = arith.constant 0.000000e+00 : f32
    %29 = vector.broadcast %cst_21 : f32 to vector<16x128xf32>
    %30 = arith.maximumf %28, %29 : vector<16x128xf32>
    %31 = arith.truncf %30 : vector<16x128xf32> to vector<16x128xbf16>
    %c3 = arith.constant 3 : index
    %c0_22 = arith.constant 0 : index
    %c0_23 = arith.constant 0 : index
    %32 = vector.load %arg2[%c3, %c0_22, %c0_23] : memref<7x128x128xbf16, #tpu.memory_space<vmem>>, vector<1x128x128xbf16>
    %33 = vector.shape_cast %32 : vector<1x128x128xbf16> to vector<128x128xbf16>
    %cst_24 = arith.constant dense<0.000000e+00> : vector<16x128xf32>
    %34 = tpu.matmul %31, %33, %cst_24 {dimension_numbers = #tpu.dot_dimension_numbers<[1], [0], [0], [1], [0, 0, 1, 1], [], []>} : vector<16x128xbf16>, vector<128x128xbf16>, vector<16x128xf32> -> vector<16x128xf32>
    %c3_25 = arith.constant 3 : index
    %c0_26 = arith.constant 0 : index
    %c0_27 = arith.constant 0 : index
    %35 = vector.load %arg3[%c3_25, %c0_26, %c0_27] : memref<7x1x128xf32, #tpu.memory_space<vmem>>, vector<1x1x128xf32>
    %36 = vector.shape_cast %35 : vector<1x1x128xf32> to vector<1x128xf32>
    %37 = vector.broadcast %36 : vector<1x128xf32> to vector<16x128xf32>
    %38 = arith.addf %34, %37 : vector<16x128xf32>
    %cst_28 = arith.constant 0.000000e+00 : f32
    %39 = vector.broadcast %cst_28 : f32 to vector<16x128xf32>
    %40 = arith.maximumf %38, %39 : vector<16x128xf32>
    %41 = arith.truncf %40 : vector<16x128xf32> to vector<16x128xbf16>
    %c4 = arith.constant 4 : index
    %c0_29 = arith.constant 0 : index
    %c0_30 = arith.constant 0 : index
    %42 = vector.load %arg2[%c4, %c0_29, %c0_30] : memref<7x128x128xbf16, #tpu.memory_space<vmem>>, vector<1x128x128xbf16>
    %43 = vector.shape_cast %42 : vector<1x128x128xbf16> to vector<128x128xbf16>
    %cst_31 = arith.constant dense<0.000000e+00> : vector<16x128xf32>
    %44 = tpu.matmul %41, %43, %cst_31 {dimension_numbers = #tpu.dot_dimension_numbers<[1], [0], [0], [1], [0, 0, 1, 1], [], []>} : vector<16x128xbf16>, vector<128x128xbf16>, vector<16x128xf32> -> vector<16x128xf32>
    %c4_32 = arith.constant 4 : index
    %c0_33 = arith.constant 0 : index
    %c0_34 = arith.constant 0 : index
    %45 = vector.load %arg3[%c4_32, %c0_33, %c0_34] : memref<7x1x128xf32, #tpu.memory_space<vmem>>, vector<1x1x128xf32>
    %46 = vector.shape_cast %45 : vector<1x1x128xf32> to vector<1x128xf32>
    %47 = vector.broadcast %46 : vector<1x128xf32> to vector<16x128xf32>
    %48 = arith.addf %44, %47 : vector<16x128xf32>
    %cst_35 = arith.constant 0.000000e+00 : f32
    %49 = vector.broadcast %cst_35 : f32 to vector<16x128xf32>
    %50 = arith.maximumf %48, %49 : vector<16x128xf32>
    %51 = arith.truncf %50 : vector<16x128xf32> to vector<16x128xbf16>
    %c5 = arith.constant 5 : index
    %c0_36 = arith.constant 0 : index
    %c0_37 = arith.constant 0 : index
    %52 = vector.load %arg2[%c5, %c0_36, %c0_37] : memref<7x128x128xbf16, #tpu.memory_space<vmem>>, vector<1x128x128xbf16>
    %53 = vector.shape_cast %52 : vector<1x128x128xbf16> to vector<128x128xbf16>
    %cst_38 = arith.constant dense<0.000000e+00> : vector<16x128xf32>
    %54 = tpu.matmul %51, %53, %cst_38 {dimension_numbers = #tpu.dot_dimension_numbers<[1], [0], [0], [1], [0, 0, 1, 1], [], []>} : vector<16x128xbf16>, vector<128x128xbf16>, vector<16x128xf32> -> vector<16x128xf32>
    %c5_39 = arith.constant 5 : index
    %c0_40 = arith.constant 0 : index
    %c0_41 = arith.constant 0 : index
    %55 = vector.load %arg3[%c5_39, %c0_40, %c0_41] : memref<7x1x128xf32, #tpu.memory_space<vmem>>, vector<1x1x128xf32>
    %56 = vector.shape_cast %55 : vector<1x1x128xf32> to vector<1x128xf32>
    %57 = vector.broadcast %56 : vector<1x128xf32> to vector<16x128xf32>
    %58 = arith.addf %54, %57 : vector<16x128xf32>
    %cst_42 = arith.constant 0.000000e+00 : f32
    %59 = vector.broadcast %cst_42 : f32 to vector<16x128xf32>
    %60 = arith.maximumf %58, %59 : vector<16x128xf32>
    %61 = arith.truncf %60 : vector<16x128xf32> to vector<16x128xbf16>
    %c6 = arith.constant 6 : index
    %c0_43 = arith.constant 0 : index
    %c0_44 = arith.constant 0 : index
    %62 = vector.load %arg2[%c6, %c0_43, %c0_44] : memref<7x128x128xbf16, #tpu.memory_space<vmem>>, vector<1x128x128xbf16>
    %63 = vector.shape_cast %62 : vector<1x128x128xbf16> to vector<128x128xbf16>
    %cst_45 = arith.constant dense<0.000000e+00> : vector<16x128xf32>
    %64 = tpu.matmul %61, %63, %cst_45 {dimension_numbers = #tpu.dot_dimension_numbers<[1], [0], [0], [1], [0, 0, 1, 1], [], []>} : vector<16x128xbf16>, vector<128x128xbf16>, vector<16x128xf32> -> vector<16x128xf32>
    %c6_46 = arith.constant 6 : index
    %c0_47 = arith.constant 0 : index
    %c0_48 = arith.constant 0 : index
    %65 = vector.load %arg3[%c6_46, %c0_47, %c0_48] : memref<7x1x128xf32, #tpu.memory_space<vmem>>, vector<1x1x128xf32>
    %66 = vector.shape_cast %65 : vector<1x1x128xf32> to vector<1x128xf32>
    %67 = vector.broadcast %66 : vector<1x128xf32> to vector<16x128xf32>
    %68 = arith.addf %64, %67 : vector<16x128xf32>
    %69 = math.tanh %68 : vector<16x128xf32>
    %c0_49 = arith.constant 0 : index
    %c0_50 = arith.constant 0 : index
    %70 = vector.load %arg4[%c0_49, %c0_50] : memref<16x128xf32, #tpu.memory_space<vmem>>, vector<16x128xf32>
    tpu.vector_store %arg4[%c0_49, %c0_50], %69 {strides = array<i32>} : memref<16x128xf32, #tpu.memory_space<vmem>>, vector<16x128xf32>,
    return
  }
  func.func @transform_0(%arg0: i32) -> (i32, i32) {
    %c0_i32 = arith.constant 0 : i32
    %c0_i32_0 = arith.constant 0 : i32
    return %arg0, %c0_i32 : i32, i32
  }
  func.func @transform_1(%arg0: i32) -> (i32, i32, i32) {
    %c0_i32 = arith.constant 0 : i32
    %c0_i32_0 = arith.constant 0 : i32
    %c0_i32_1 = arith.constant 0 : i32
    %c0_i32_2 = arith.constant 0 : i32
    return %c0_i32, %c0_i32_0, %c0_i32_1 : i32, i32, i32
  }
  func.func @transform_2(%arg0: i32) -> (i32, i32, i32) {
    %c0_i32 = arith.constant 0 : i32
    %c0_i32_0 = arith.constant 0 : i32
    %c0_i32_1 = arith.constant 0 : i32
    %c0_i32_2 = arith.constant 0 : i32
    return %c0_i32, %c0_i32_0, %c0_i32_1 : i32, i32, i32
  }
  func.func @transform_3(%arg0: i32) -> (i32, i32) {
    %c0_i32 = arith.constant 0 : i32
    %c0_i32_0 = arith.constant 0 : i32
    return %arg0, %c0_i32 : i32, i32
  }
}

</mosaic_0001>

<bundles_post_ra>
// kernel: tpu_custom_call.1
= control target key start
LH: loop header
LB: loop body
LE: loop exit
PB: predicated region body
PF: predicated region fallthrough
CT: control target
= control target key end

     0   :  { %8 = vsyncpa [#allocation3], 0  ;;  %s1379_s0 = inlined_call_operand.hbm [shape: bf16[16,32], index: 0, kind: input, shape index: {}]   ;;  %s1380_s1 = inlined_call_operand.hbm [shape: bf16[7,128,128], index: 1, kind: input, shape index: {}]   ;;  %s1381_s2 = inlined_call_operand.vmem [shape: f32[7,1,128], index: 2, kind: input, shape index: {}]   ;;  %s1382_s3 = inlined_call_operand.hbm [shape: f32[16,128], index: 3, kind: output, shape index: {}]  }
   0x1   :  { %9 = vsyncpa [#allocation6], 0 }
   0x2   :  { %10 = vsyncpa [#allocation4], 0  ;;  %s1229_s12 = smov [#allocation2]   ;;  %s1157_s16 = scalar_lea.hbm %s1379_s0, 128 }
   0x3   :  { %s16_s13 = sshll.u32 %s1229_s12, 4  ;;  %p1158_p0 = scmp.ne.s32.totalorder %s1379_s0, %s1157_s16  ;;  %s17_s13 = int_to_ptr.vmem [resolvable:$true] %s16_s13 }
   0x4   :  { %p1161_p1 = scmp.lt.u32.totalorder %s1157_s16, %s1379_s0 }
   0x6   :  { %p1163_p2 = pnand %p1161_p1, %p1158_p0 }
   0x8   :  { %1166 = shalt.err (!%p1163_p2)
}
   0x9   :  { %s1167_s21 = scalar_lea.vmem %s17_s13, 128  ;;  %p1172_p4 = scmp.lt.s32.totalorder %s17_s13, %s17_s13 }
   0xa   :  { %p1168_p3 = scmp.ne.s32.totalorder %s17_s13, %s1167_s21  ;;  %p1173_p5 = scmp.lt.s32.totalorder %s1167_s21, %s1167_s21 }
   0xc   :  { %p1174_p6 = por %p1173_p5, %p1172_p4 }
   0xe   :  { %p1175_p7 = pnand %p1174_p6, %p1168_p3 }
  0x10   :  { %1178 = shalt.err (!%p1175_p7)
}
  0x11   :  { %s1230_s22 = smov 64   ;;  %s1231_s23 = smov 4  }
  0x12   :  { %22 = dma.hbm_to_vmem [thread:$0]  %s1379_s0, 128, %s17_s13, [#allocation3], %s1230_s22, %s1230_s22, %s1231_s23  }
  0x13   :  { %s1232_s26 = smov [#allocation5]   ;;  %s1179_s30 = scalar_lea.hbm %s1380_s1, 7168 }
  0x14   :  { %s28_s27 = sshll.u32 %s1232_s26, 4  ;;  %p1180_p8 = scmp.ne.s32.totalorder %s1380_s1, %s1179_s30  ;;  %s29_s27 = int_to_ptr.vmem [resolvable:$true] %s28_s27 }
  0x15   :  { %p1183_p9 = scmp.lt.u32.totalorder %s1179_s30, %s1380_s1 }
  0x17   :  { %p1185_p10 = pnand %p1183_p9, %p1180_p8 }
  0x19   :  { %1188 = shalt.err (!%p1185_p10)
}
  0x1a   :  { %s1189_s8 = scalar_lea.vmem %s29_s27, 7168  ;;  %p1194_p12 = scmp.lt.s32.totalorder %s29_s27, %s29_s27 }
  0x1b   :  { %p1190_p11 = scmp.ne.s32.totalorder %s29_s27, %s1189_s8  ;;  %p1195_p13 = scmp.lt.s32.totalorder %s1189_s8, %s1189_s8 }
  0x1d   :  { %p1196_p0 = por %p1195_p13, %p1194_p12 }
  0x1f   :  { %p1197_p1 = pnand %p1196_p0, %p1190_p11 }
  0x21   :  { %1200 = shalt.err (!%p1197_p1)
}
  0x22   :  { %34 = dma.hbm_to_vmem [thread:$0]  %s1380_s1, 7168, %s29_s27, [#allocation6], %s1230_s22, %s1230_s22, %s1231_s23  }
  0x23   :  { %1223 = dma.done.wait [#allocation3], 128  }
  0x24   :  { %1224 = vsyncadd [#allocation3], 4294967168 }
  0x25   :  { %1225 = dma.done.wait [#allocation6], 7168  }
  0x26   :  { %1226 = vsyncadd [#allocation6], 4294960128  ;;  %v1233_v0 = vmov 0.0   ;;  %vm1234_vm0 = vmmov 0   ;;  %v1102_v1 = vld [vmem:[#allocation5] sm:$0xff]   ;;  %v1103_v2 = vld [vmem:[#allocation5 + $0x8] sm:$0xff]  }
  0x27   :  { %965 = vmatprep.subr.bf16.mxu0 %v1233_v0  ;;  %969 = vmatprep.mubr.msk.bf16.mxu0 %vm1234_vm0, %v1233_v0  ;;  %v1105_v3 = vld [vmem:[#allocation5 + $0x40] sm:$0xff]   ;;  %v1104_v4 = vld [vmem:[#allocation2] sm:$0xff]   ;;  %v1106_v5 = vld [vmem:[#allocation5 + $0x48] sm:$0xff]   ;;  %vm74_vm1 = vcmask 261120   ;;  %s1235_s23 = smov [#allocation7]  }
  0x28   :  { %973 = vmatprep.subr.bf16.mxu1 %v1233_v0  ;;  %989 = vmatprep.mubr.msk.bf16.mxu1 %vm1234_vm0, %v1233_v0  ;;  %v1107_v6 = vld [vmem:[#allocation5 + $0x50] sm:$0xff]   ;;  %v1108_v7 = vld [vmem:[#allocation5 + $0x58] sm:$0xff]   ;;  %v1109_v8 = vld [vmem:[#allocation5 + $0x60] sm:$0xff]   ;;  %s830_s24 = sshll.u32 %s1235_s23, 4  ;;  %s831_s24 = int_to_ptr.vmem [resolvable:$true] %s830_s24 }
  0x29   :  { %966 = vmatpush3.bf16.msra.mxu0 %v1102_v1  ;;  %974 = vmatpush3.bf16.msra.mxu1 %v1105_v3  ;;  %v1110_v9 = vld [vmem:[#allocation5 + $0x68] sm:$0xff]   ;;  %v1111_v10 = vld [vmem:[#allocation5 + $0x70] sm:$0xff]   ;;  %v1112_v11 = vld [vmem:[#allocation5 + $0x78] sm:$0xff]   ;;  %s1201_s25 = scalar_lea.vmem %s831_s24, 256  ;;  %p1206_p3 = scmp.lt.s32.totalorder %s831_s24, %s831_s24 }
  0x2a   :  { %967 = vmatprep.subr.bf16.mxu0 %v1233_v0  ;;  %975 = vmatprep.subr.bf16.mxu1 %v1233_v0  ;;  %v1113_v12 = vld [vmem:[#allocation5 + $0x80] sm:$0xff]   ;;  %v1114_v13 = vld [vmem:[#allocation5 + $0x88] sm:$0xff]   ;;  %v1115_v14 = vld [vmem:[#allocation5 + $0x90] sm:$0xff]   ;;  %p1202_p2 = scmp.ne.s32.totalorder %s831_s24, %s1201_s25  ;;  %p1207_p4 = scmp.lt.s32.totalorder %s1201_s25, %s1201_s25 }
  0x2b   :  { %v1116_v15 = vld [vmem:[#allocation5 + $0x98] sm:$0xff]   ;;  %v1117_v16 = vld [vmem:[#allocation5 + $0xa0] sm:$0xff]   ;;  %v1118_v17 = vld [vmem:[#allocation5 + $0xa8] sm:$0xff]  }
  0x2c   :  { %v843_v18 = vld [vmem:[%s1381_s2] ss:$0 sm:$0xff]  ;;  %v1119_v28 = vld [vmem:[#allocation5 + $0xb0] sm:$0xff]   ;;  %v1121_v30 = vld [vmem:[#allocation5 + $0xc0] sm:$0xff]   ;;  %p1208_p5 = por %p1207_p4, %p1206_p3 }
  0x2d   :  { %968 = vmatpush3.bf16.msra.mxu0 %v1103_v2  ;;  %976 = vmatpush3.bf16.msra.mxu1 %v1106_v5  ;;  %v1120_v29 = vld [vmem:[#allocation5 + $0xb8] sm:$0xff]   ;;  %v1122_v31 = vld [vmem:[#allocation5 + $0xc8] sm:$0xff]   ;;  %v1123_v32 = vld [vmem:[#allocation5 + $0xd0] sm:$0xff]  }
  0x2e   :  { %993 = vmatprep.subr.bf16.mxu0 %v1233_v0  ;;  %977 = vmatprep.subr.bf16.mxu1 %v1233_v0  ;;  %v1124_v33 = vld [vmem:[#allocation5 + $0xd8] sm:$0xff]   ;;  %v1125_v34 = vld [vmem:[#allocation5 + $0xe0] sm:$0xff]   ;;  %v1126_v35 = vld [vmem:[#allocation5 + $0xe8] sm:$0xff]   ;;  %p1209_p6 = pnand %p1208_p5, %p1202_p2 }
  0x2f   :  { %v849_v36 = vld [vmem:[%s1381_s2 + $0x1] ss:$0 sm:$0xff]  ;;  %v1127_v46 = vld [vmem:[#allocation5 + $0xf0] sm:$0xff]   ;;  %v1129_v48 = vld [vmem:[#allocation5 + $0x100] sm:$0xff]  }
  0x30   :  { %970 = vmatmul.mubr.msk.bf16.vlgmr.msra.gmra.mrb[0].mxu0 %vm74_vm1, %v1104_v4  ;;  %v1128_v47 = vld [vmem:[#allocation5 + $0xf8] sm:$0xff]   ;;  %v1130_v49 = vld [vmem:[#allocation5 + $0x108] sm:$0xff]   ;;  %v1131_v50 = vld [vmem:[#allocation5 + $0x110] sm:$0xff]  }
  0x31   :  { %1009 = vmatprep.mubr.msk.bf16.mxu0 %vm1234_vm0, %v1233_v0  ;;  %978 = vmatpush3.bf16.msra.mxu1 %v1107_v6  ;;  %v1132_v51 = vld [vmem:[#allocation5 + $0x118] sm:$0xff]   ;;  %v1133_v52 = vld [vmem:[#allocation5 + $0x120] sm:$0xff]   ;;  %v1134_v53 = vld [vmem:[#allocation5 + $0x128] sm:$0xff]  }
  0x32   :  { %979 = vmatprep.subr.bf16.mxu1 %v1233_v0  ;;  %994 = vmatpush3.bf16.msra.mxu0 %v1113_v12  ;;  %v859_v54 = vld [vmem:[%s1381_s2 + $0x2] ss:$0 sm:$0xff]  ;;  %v1135_v1 = vld [vmem:[#allocation5 + $0x130] sm:$0xff]   ;;  %v1137_v3 = vld [vmem:[#allocation5 + $0x140] sm:$0xff]  }
  0x33   :  { %995 = vmatprep.subr.bf16.mxu0 %v1233_v0  ;;  %v1136_v2 = vld [vmem:[#allocation5 + $0x138] sm:$0xff]   ;;  %v1138_v4 = vld [vmem:[#allocation5 + $0x148] sm:$0xff]   ;;  %v1139_v5 = vld [vmem:[#allocation5 + $0x150] sm:$0xff]  }
  0x34   :  { %v1140_v6 = vld [vmem:[#allocation5 + $0x158] sm:$0xff]  }
  0x35   :  { %980 = vmatpush3.bf16.msra.mxu1 %v1108_v7  ;;  %v1141_v7 = vld [vmem:[#allocation5 + $0x160] sm:$0xff]  }
  0x36   :  { %981 = vmatprep.subr.bf16.mxu1 %v1233_v0  ;;  %996 = vmatpush3.bf16.msra.mxu0 %v1114_v13 }
  0x37   :  { %997 = vmatprep.subr.bf16.mxu0 %v1233_v0 }
  0x39   :  { %982 = vmatpush3.bf16.msra.mxu1 %v1109_v8  ;;  %v1142_v8 = vld [vmem:[#allocation5 + $0x168] sm:$0xff]  }
  0x3a   :  { %983 = vmatprep.subr.bf16.mxu1 %v1233_v0  ;;  %998 = vmatpush3.bf16.msra.mxu0 %v1115_v14 }
  0x3b   :  { %999 = vmatprep.subr.bf16.mxu0 %v1233_v0 }
  0x3d   :  { %984 = vmatpush3.bf16.msra.mxu1 %v1110_v9  ;;  %v869_v9 = vld [vmem:[%s1381_s2 + $0x3] ss:$0 sm:$0xff] }
  0x3e   :  { %985 = vmatprep.subr.bf16.mxu1 %v1233_v0  ;;  %1000 = vmatpush3.bf16.msra.mxu0 %v1116_v15 }
  0x3f   :  { %1001 = vmatprep.subr.bf16.mxu0 %v1233_v0 }
  0x41   :  { %986 = vmatpush3.bf16.msra.mxu1 %v1111_v10 }
  0x42   :  { %987 = vmatprep.subr.bf16.mxu1 %v1233_v0  ;;  %1002 = vmatpush3.bf16.msra.mxu0 %v1117_v16 }
  0x43   :  { %1003 = vmatprep.subr.bf16.mxu0 %v1233_v0 }
  0x45   :  { %988 = vmatpush3.bf16.msra.mxu1 %v1112_v11 }
  0x46   :  { %1013 = vmatprep.subr.bf16.mxu1 %v1233_v0  ;;  %1004 = vmatpush3.bf16.msra.mxu0 %v1118_v17 }
  0x47   :  { %1005 = vmatprep.subr.bf16.mxu0 %v1233_v0 }
  0x4a   :  { %1006 = vmatpush3.bf16.msra.mxu0 %v1119_v28 }
  0x4b   :  { %1007 = vmatprep.subr.bf16.mxu0 %v1233_v0 }
  0x4e   :  { %1008 = vmatpush3.bf16.msra.mxu0 %v1120_v29 }
  0x4f   :  { %1033 = vmatprep.subr.bf16.mxu0 %v1233_v0 }
 0x103   :  { %v112_v19 = vpop.f32.mrb[0].mxu0 }
 0x104   :  { %v113_v20 = vadd.f32 %v843_v18, %v112_v19  ;;  %v971_v21 = vpop.f32.mrb[1].mxu0  ;;  %v1143_v19 = vld [vmem:[#allocation5 + $0x170] sm:$0xff]  }
 0x105   :  { %v115_v22 = vpop.f32.mrb[2].mxu0  ;;  %v1145_v21 = vld [vmem:[#allocation5 + $0x180] sm:$0xff]  }
 0x106   :  { %v116_v23 = vadd.f32 %v843_v18, %v115_v22  ;;  %v972_v24 = vpop.f32.mrb[3].mxu0  ;;  %v119_v25 = vmax.f32 %v113_v20, 0.0  ;;  %v1144_v20 = vld [vmem:[#allocation5 + $0x178] sm:$0xff]   ;;  %v1146_v22 = vld [vmem:[#allocation5 + $0x188] sm:$0xff]  }
 0x107   :  { %v1148_v24 = vld [vmem:[#allocation5 + $0x198] sm:$0xff]  }
 0x108   :  { %v120_v26 = vmax.f32 %v116_v23, 0.0  ;;  %v1147_v23 = vld [vmem:[#allocation5 + $0x190] sm:$0xff]  }
 0x10a   :  { %v121_v27 = vpack.c.bf16 %v120_v26, %v119_v25  ;;  %v1149_v25 = vld [vmem:[#allocation5 + $0x1a0] sm:$0xff]   ;;  %v1150_v26 = vld [vmem:[#allocation5 + $0x1a8] sm:$0xff]  }
 0x10c   :  { %990 = vmatmul.mubr.bf16.vlgmr.msra.gmra.mrb[0].mxu1 %v121_v27  ;;  %v879_v27 = vld [vmem:[%s1381_s2 + $0x4] ss:$0 sm:$0xff] }
 0x10d   :  { %1029 = vmatprep.mubr.msk.bf16.mxu1 %vm1234_vm0, %v1233_v0  ;;  %1014 = vmatpush3.bf16.msra.mxu1 %v1121_v30 }
 0x10e   :  { %1015 = vmatprep.subr.bf16.mxu1 %v1233_v0 }
 0x111   :  { %1016 = vmatpush3.bf16.msra.mxu1 %v1122_v31 }
 0x112   :  { %1017 = vmatprep.subr.bf16.mxu1 %v1233_v0 }
 0x115   :  { %1018 = vmatpush3.bf16.msra.mxu1 %v1123_v32 }
 0x116   :  { %1019 = vmatprep.subr.bf16.mxu1 %v1233_v0 }
 0x119   :  { %1020 = vmatpush3.bf16.msra.mxu1 %v1124_v33 }
 0x11a   :  { %1021 = vmatprep.subr.bf16.mxu1 %v1233_v0 }
 0x11d   :  { %1022 = vmatpush3.bf16.msra.mxu1 %v1125_v34 }
 0x11e   :  { %1023 = vmatprep.subr.bf16.mxu1 %v1233_v0 }
 0x121   :  { %1024 = vmatpush3.bf16.msra.mxu1 %v1126_v35 }
 0x122   :  { %1025 = vmatprep.subr.bf16.mxu1 %v1233_v0 }
 0x125   :  { %1026 = vmatpush3.bf16.msra.mxu1 %v1127_v46 }
 0x126   :  { %1027 = vmatprep.subr.bf16.mxu1 %v1233_v0 }
 0x129   :  { %1028 = vmatpush3.bf16.msra.mxu1 %v1128_v47 }
 0x12a   :  { %1053 = vmatprep.subr.bf16.mxu1 %v1233_v0 }
 0x1df   :  { %v229_v37 = vpop.f32.mrb[0].mxu1 }
 0x1e0   :  { %v230_v38 = vadd.f32 %v849_v36, %v229_v37  ;;  %v991_v39 = vpop.f32.mrb[1].mxu1  ;;  %v1151_v37 = vld [vmem:[#allocation5 + $0x1b0] sm:$0xff]  }
 0x1e1   :  { %v232_v40 = vpop.f32.mrb[2].mxu1  ;;  %v889_v39 = vld [vmem:[%s1381_s2 + $0x5] ss:$0 sm:$0xff] }
 0x1e2   :  { %v233_v41 = vadd.f32 %v849_v36, %v232_v40  ;;  %v992_v42 = vpop.f32.mrb[3].mxu1  ;;  %v236_v43 = vmax.f32 %v230_v38, 0.0  ;;  %v1152_v38 = vld [vmem:[#allocation5 + $0x1b8] sm:$0xff]  }
 0x1e4   :  { %v237_v44 = vmax.f32 %v233_v41, 0.0 }
 0x1e6   :  { %v238_v45 = vpack.c.bf16 %v237_v44, %v236_v43 }
 0x1e8   :  { %1010 = vmatmul.mubr.bf16.vlgmr.msra.gmra.mrb[4].mxu0 %v238_v45 }
 0x1e9   :  { %1049 = vmatprep.mubr.msk.bf16.mxu0 %vm1234_vm0, %v1233_v0  ;;  %1034 = vmatpush3.bf16.msra.mxu0 %v1129_v48 }
 0x1ea   :  { %1035 = vmatprep.subr.bf16.mxu0 %v1233_v0 }
 0x1ed   :  { %1036 = vmatpush3.bf16.msra.mxu0 %v1130_v49 }
 0x1ee   :  { %1037 = vmatprep.subr.bf16.mxu0 %v1233_v0 }
 0x1f1   :  { %1038 = vmatpush3.bf16.msra.mxu0 %v1131_v50 }
 0x1f2   :  { %1039 = vmatprep.subr.bf16.mxu0 %v1233_v0 }
 0x1f5   :  { %1040 = vmatpush3.bf16.msra.mxu0 %v1132_v51 }
 0x1f6   :  { %1041 = vmatprep.subr.bf16.mxu0 %v1233_v0 }
 0x1f9   :  { %1042 = vmatpush3.bf16.msra.mxu0 %v1133_v52 }
 0x1fa   :  { %1043 = vmatprep.subr.bf16.mxu0 %v1233_v0 }
 0x1fd   :  { %1044 = vmatpush3.bf16.msra.mxu0 %v1134_v53 }
 0x1fe   :  { %1045 = vmatprep.subr.bf16.mxu0 %v1233_v0 }
 0x201   :  { %1046 = vmatpush3.bf16.msra.mxu0 %v1135_v1 }
 0x202   :  { %1047 = vmatprep.subr.bf16.mxu0 %v1233_v0 }
 0x205   :  { %1048 = vmatpush3.bf16.msra.mxu0 %v1136_v2 }
 0x206   :  { %1073 = vmatprep.subr.bf16.mxu0 %v1233_v0 }
 0x2bb   :  { %v346_v55 = vpop.f32.mrb[4].mxu0 }
 0x2bc   :  { %v347_v56 = vadd.f32 %v859_v54, %v346_v55  ;;  %v1011_v57 = vpop.f32.mrb[5].mxu0 }
 0x2bd   :  { %v349_v58 = vpop.f32.mrb[6].mxu0 }
 0x2be   :  { %v350_v59 = vadd.f32 %v859_v54, %v349_v58  ;;  %v1012_v60 = vpop.f32.mrb[7].mxu0  ;;  %v353_v61 = vmax.f32 %v347_v56, 0.0 }
 0x2c0   :  { %v354_v62 = vmax.f32 %v350_v59, 0.0 }
 0x2c2   :  { %v355_v63 = vpack.c.bf16 %v354_v62, %v353_v61 }
 0x2c4   :  { %1030 = vmatmul.mubr.bf16.vlgmr.msra.gmra.mrb[4].mxu1 %v355_v63 }
 0x2c5   :  { %1069 = vmatprep.mubr.msk.bf16.mxu1 %vm1234_vm0, %v1233_v0  ;;  %1054 = vmatpush3.bf16.msra.mxu1 %v1137_v3 }
 0x2c6   :  { %1055 = vmatprep.subr.bf16.mxu1 %v1233_v0 }
 0x2c9   :  { %1056 = vmatpush3.bf16.msra.mxu1 %v1138_v4 }
 0x2ca   :  { %1057 = vmatprep.subr.bf16.mxu1 %v1233_v0 }
 0x2cd   :  { %1058 = vmatpush3.bf16.msra.mxu1 %v1139_v5 }
 0x2ce   :  { %1059 = vmatprep.subr.bf16.mxu1 %v1233_v0 }
 0x2d1   :  { %1060 = vmatpush3.bf16.msra.mxu1 %v1140_v6 }
 0x2d2   :  { %1061 = vmatprep.subr.bf16.mxu1 %v1233_v0 }
 0x2d5   :  { %1062 = vmatpush3.bf16.msra.mxu1 %v1141_v7 }
 0x2d6   :  { %1063 = vmatprep.subr.bf16.mxu1 %v1233_v0 }
 0x2d9   :  { %1064 = vmatpush3.bf16.msra.mxu1 %v1142_v8 }
 0x2da   :  { %1065 = vmatprep.subr.bf16.mxu1 %v1233_v0 }
 0x2dd   :  { %1066 = vmatpush3.bf16.msra.mxu1 %v1143_v19 }
 0x2de   :  { %1067 = vmatprep.subr.bf16.mxu1 %v1233_v0 }
 0x2e1   :  { %1068 = vmatpush3.bf16.msra.mxu1 %v1144_v20 }
 0x397   :  { %v463_v10 = vpop.f32.mrb[4].mxu1 }
 0x398   :  { %v464_v11 = vadd.f32 %v869_v9, %v463_v10  ;;  %v1031_v12 = vpop.f32.mrb[5].mxu1 }
 0x399   :  { %v466_v13 = vpop.f32.mrb[6].mxu1 }
 0x39a   :  { %v467_v14 = vadd.f32 %v869_v9, %v466_v13  ;;  %v1032_v15 = vpop.f32.mrb[7].mxu1  ;;  %v470_v16 = vmax.f32 %v464_v11, 0.0 }
 0x39c   :  { %v471_v17 = vmax.f32 %v467_v14, 0.0 }
 0x39e   :  { %v472_v18 = vpack.c.bf16 %v471_v17, %v470_v16 }
 0x3a0   :  { %1050 = vmatmul.mubr.bf16.vlgmr.msra.gmra.mrb[8].mxu0 %v472_v18 }
 0x3a1   :  { %1089 = vmatprep.mubr.msk.bf16.mxu0 %vm1234_vm0, %v1233_v0  ;;  %1074 = vmatpush3.bf16.msra.mxu0 %v1145_v21 }
 0x3a2   :  { %1075 = vmatprep.subr.bf16.mxu0 %v1233_v0 }
 0x3a5   :  { %1076 = vmatpush3.bf16.msra.mxu0 %v1146_v22 }
 0x3a6   :  { %1077 = vmatprep.subr.bf16.mxu0 %v1233_v0 }
 0x3a9   :  { %1078 = vmatpush3.bf16.msra.mxu0 %v1147_v23 }
 0x3aa   :  { %1079 = vmatprep.subr.bf16.mxu0 %v1233_v0 }
 0x3ad   :  { %1080 = vmatpush3.bf16.msra.mxu0 %v1148_v24 }
 0x3ae   :  { %1081 = vmatprep.subr.bf16.mxu0 %v1233_v0 }
 0x3b1   :  { %1082 = vmatpush3.bf16.msra.mxu0 %v1149_v25 }
 0x3b2   :  { %1083 = vmatprep.subr.bf16.mxu0 %v1233_v0 }
 0x3b5   :  { %1084 = vmatpush3.bf16.msra.mxu0 %v1150_v26 }
 0x3b6   :  { %1085 = vmatprep.subr.bf16.mxu0 %v1233_v0 }
 0x3b9   :  { %1086 = vmatpush3.bf16.msra.mxu0 %v1151_v37 }
 0x3ba   :  { %1087 = vmatprep.subr.bf16.mxu0 %v1233_v0  ;;  %v899_v0 = vld [vmem:[%s1381_s2 + $0x6] ss:$0 sm:$0xff] }
 0x3bd   :  { %1088 = vmatpush3.bf16.msra.mxu0 %v1152_v38 }
 0x473   :  { %v580_v28 = vpop.f32.mrb[8].mxu0 }
 0x474   :  { %v581_v29 = vadd.f32 %v879_v27, %v580_v28  ;;  %v1051_v30 = vpop.f32.mrb[9].mxu0 }
 0x475   :  { %v583_v31 = vpop.f32.mrb[10].mxu0 }
 0x476   :  { %v584_v32 = vadd.f32 %v879_v27, %v583_v31  ;;  %v1052_v33 = vpop.f32.mrb[11].mxu0  ;;  %v587_v34 = vmax.f32 %v581_v29, 0.0 }
 0x478   :  { %v588_v35 = vmax.f32 %v584_v32, 0.0 }
 0x47a   :  { %v589_v36 = vpack.c.bf16 %v588_v35, %v587_v34 }
 0x47c   :  { %1070 = vmatmul.mubr.bf16.vlgmr.msra.gmra.mrb[8].mxu1 %v589_v36 }
 0x54f   :  { %v697_v40 = vpop.f32.mrb[8].mxu1 }
 0x550   :  { %v698_v41 = vadd.f32 %v889_v39, %v697_v40  ;;  %v1071_v42 = vpop.f32.mrb[9].mxu1 }
 0x551   :  { %v700_v43 = vpop.f32.mrb[10].mxu1 }
 0x552   :  { %v701_v44 = vadd.f32 %v889_v39, %v700_v43  ;;  %v1072_v45 = vpop.f32.mrb[11].mxu1  ;;  %v704_v46 = vmax.f32 %v698_v41, 0.0 }
 0x554   :  { %v705_v47 = vmax.f32 %v701_v44, 0.0 }
 0x556   :  { %v706_v48 = vpack.c.bf16 %v705_v47, %v704_v46 }
 0x558   :  { %1090 = vmatmul.mubr.bf16.vlgmr.msra.gmra.mrb[12].mxu0 %v706_v48 }
 0x62b   :  { %v814_v49 = vpop.f32.mrb[12].mxu0 }
 0x62c   :  { %v815_v50 = vadd.f32 %v899_v0, %v814_v49  ;;  %v1091_v51 = vpop.f32.mrb[13].mxu0 }
 0x62d   :  { %v817_v52 = vpop.f32.mrb[14].mxu0 }
 0x62e   :  { %1153 = vtanh.f32 %v815_v50  ;;  %v818_v53 = vadd.f32 %v899_v0, %v817_v52  ;;  %v1092_v54 = vpop.f32.mrb[15].mxu0 }
 0x630   :  { %1155 = vtanh.f32 %v818_v53 }
 0x638   :  { %v1154_v55 = vpop.eup %1153 }
 0x639   :  { %823 = vst [vmem:[#allocation7] sm:$0xff] %v1154_v55 }
 0x63a   :  { %v1156_v56 = vpop.eup %1155 }
 0x63b   :  { %824 = vst [vmem:[#allocation7 + $0x8] sm:$0xff] %v1156_v56 }
 0x63c   :  { %1212 = shalt.err (!%p1209_p6)
}
 0x63d   :  { %s1213_s27 = scalar_lea.hbm %s1382_s3, 256 }
 0x63e   :  { %p1214_p7 = scmp.ne.s32.totalorder %s1382_s3, %s1213_s27  ;;  %p1217_p8 = scmp.lt.u32.totalorder %s1213_s27, %s1382_s3 }
 0x640   :  { %p1219_p9 = pnand %p1217_p8, %p1214_p7 }
 0x642   :  { %1222 = shalt.err (!%p1219_p9)
}
 0x643   :  { %s1236_s5 = smov 128   ;;  %s1237_s6 = smov 8  }
 0x644   :  { %836 = dma.vmem_to_hbm [thread:$0]  %s831_s24, 256, %s1382_s3, [#allocation4], %s1236_s5, %s1236_s5, %s1237_s6  }
 0x645   :  { %1227 = dma.done.wait [#allocation4], 256  }
 0x646   :  { %1228 = vsyncadd [#allocation4], 4294967040 }
 0x647   :  { %840 = vsyncpa [#allocation3], 1 }
 0x648   :  { %841 = vsyncpa [#allocation6], 1 }
 0x649   :  { %842 = vsyncpa [#allocation4], 1 }

</bundles_post_ra>
